<compile_context>
chip_gen: v7x
topology: tpu7x:2x2x1
jax: 0.10.0
libtpu: 0.0.40
codegen_flags: <defaults>
</compile_context>

<pallas_src>
import functools

import jax
import jax.numpy as jnp
import numpy as np
from jax.experimental import pallas as pl
from jax.experimental.pallas import tpu as pltpu


def _round_up(x, m):
    return (x + m - 1) // m * m


# ----------------------------- Pallas kernel --------------------------------

def _tcn_decoder_kernel(x_ref, w_ref, b_ref, o_ref, *, layer_meta, mxu_dtype):
    """Collapsed decoder (last timestep only) for one batch block.

    x_ref: (B_BLK, C0) f32 last-timestep activations.
    w_ref: (n_mats, C_lane, C_lane) bf16 packed weights (taps pre-summed,
           zero-padded to a common square).
    b_ref: (n_bias, C_lane) f32 packed biases (zero-padded).
    o_ref: (B_BLK, num_inputs) f32 output.
    layer_meta: static list of dicts with slab indices per layer.
    """
    c_lane = w_ref.shape[-1]

    h = x_ref[...]                                   # (B_BLK, C0) f32
    c0 = h.shape[-1]
    if c0 < c_lane:                                  # dead for the demo shapes
        h = jnp.concatenate(
            [h, jnp.zeros((h.shape[0], c_lane - c0), h.dtype)], axis=-1)

    def matmul(a, w, b):
        # bf16 operands on the MXU, f32 accumulate, f32 bias add.
        return jax.lax.dot_general(
            a.astype(mxu_dtype), w,
            dimension_numbers=(((1,), (0,)), ((), ())),
            preferred_element_type=jnp.float32) + b

    # TODO(synk): dropout layers are treated as identity (inference only).
    for m in layer_meta:
        b1 = b_ref[m['b1']:m['b1'] + 1, :]           # (1, C_lane) f32
        b2 = b_ref[m['b2']:m['b2'] + 1, :]
        y1 = matmul(jnp.maximum(h, 0.0), w_ref[m['w1']], b1)
        y2 = matmul(jnp.maximum(y1, 0.0), w_ref[m['w2']], b2)
        if m['wd'] is not None:                      # 1x1 transposed conv
            res = matmul(h, w_ref[m['wd']], b_ref[m['bd']:m['bd'] + 1, :])
        else:
            res = h
        h = jnp.maximum(y2 + res, 0.0)

    o_ref[...] = h[:, :o_ref.shape[-1]].astype(o_ref.dtype)


# ------------------------- parameter packing ---------------------------------

def pack_decoder_params(params, mxu_dtype=jnp.bfloat16):
    """Pack all layers into one weight slab + one bias slab.

    For every layer the two conv taps are summed (exact at t = L-1, the only
    timestep the module returns).  Every matrix is zero-padded to a common
    (C_lane, C_lane) square and every bias to (C_lane,) so the kernel loop is
    uniform; the zero padding stays zero through matmul/bias/relu/residual.
    """
    dims = []
    for p in params:
        dims += [p['w1a'].shape[0], p['w1a'].shape[1]]
    c_lane = _round_up(max(dims), 8)

    def pad_mat(w):
        r, c = w.shape
        return jnp.pad(w, ((0, c_lane - r), (0, c_lane - c)))

    def pad_bias(b):
        b = b.reshape(-1)
        return jnp.pad(b, (0, c_lane - b.shape[0]))

    mats, biases, meta = [], [], []
    for p in params:
        m = {}
        m['w1'] = len(mats); mats.append(pad_mat(p['w1a'] + p['w1b']))
        m['w2'] = len(mats); mats.append(pad_mat(p['w2a'] + p['w2b']))
        m['b1'] = len(biases); biases.append(pad_bias(p['b1']))
        m['b2'] = len(biases); biases.append(pad_bias(p['b2']))
        if 'wd' in p:
            m['wd'] = len(mats); mats.append(pad_mat(p['wd']))
            m['bd'] = len(biases); biases.append(pad_bias(p['bd']))
        else:
            m['wd'] = None
            m['bd'] = None
        meta.append(m)

    w_slab = jnp.stack(mats).astype(mxu_dtype)        # (n_mats, C_lane, C_lane)
    b_slab = jnp.stack(biases).astype(jnp.float32)    # (n_bias, C_lane)
    return w_slab, b_slab, meta, c_lane


# ------------------------------- wrapper --------------------------------------

def tcn_decoder_forward(x_ncl, tgt, params, *, mxu_dtype=jnp.bfloat16):
    """x_ncl: (B, num_channels[0], L) like the PyTorch module. tgt is unused."""
    del tgt  # unused by TCN_decoder.forward
    B, C0, L = x_ncl.shape
    c_out = params[-1]['w1a'].shape[1]                # == num_inputs

    w_slab, b_slab, meta, _ = pack_decoder_params(params, mxu_dtype)

    # Only x[:, :, L-1] ever reaches the output (shift is the identity at the
    # last timestep for every dilation >= 1), so slice it out up front and pad
    # the batch to a sublane multiple for dense, aligned loads/stores.
    x_last = x_ncl[:, :, L - 1].astype(jnp.float32)   # (B, C0)
    b_blk = 256 if B > 256 else _round_up(B, 8)
    b_pad = _round_up(B, b_blk)
    if b_pad != B:
        x_last = jnp.pad(x_last, ((0, b_pad - B), (0, 0)))
    nb = b_pad // b_blk                               # single step for small B

    kernel = functools.partial(_tcn_decoder_kernel, layer_meta=meta,
                               mxu_dtype=mxu_dtype)
    out = pl.pallas_call(
        kernel,
        grid=(nb,),
        in_specs=[
            pl.BlockSpec((b_blk, C0), lambda i: (i, 0)),      # batch blocks
            pl.BlockSpec(w_slab.shape, lambda i: (0, 0, 0)),  # resident slab
            pl.BlockSpec(b_slab.shape, lambda i: (0, 0)),     # resident slab
        ],
        out_specs=pl.BlockSpec((b_blk, c_out), lambda i: (i, 0)),
        out_shape=jax.ShapeDtypeStruct((b_pad, c_out), jnp.float32),
        compiler_params=pltpu.CompilerParams(
            # With >1 batch blocks the grid splits across v7x's two TCs; for
            # the demo (one tiny step) it is a no-op.
            dimension_semantics=("parallel",),
            # Well above what this kernel needs; safe on v7x (64 MiB physical)
            # and leaves room to raise toward ~100 MiB on v5e/v6e if B_BLK is
            # scaled up.
            vmem_limit_bytes=48 * 1024 * 1024,
        ),
    )(x_last, w_slab, b_slab)

    return out[:B, None, :]                           # (B, 1, num_inputs)


# ------------------------------ init (PyTorch-like) --------------------------

def init_tcn_decoder_params(key, num_inputs, num_channels, kernel_size=2):
    assert kernel_size == 2, "derived for kernel_size=2 (module default)"
    params = []
    num_levels = len(num_channels)
    for i in range(num_levels):
        cin = num_channels[i]
        cout = num_inputs if i == num_levels - 1 else num_channels[i + 1]
        dilation = 2 ** (num_levels - 1 - i)
        key, *ks = jax.random.split(key, 9)
        # ConvTranspose1d weight is (Cin, Cout, K); w*a == W[:,:,0], w*b == W[:,:,1]
        p = {
            'dilation': dilation,
            'w1a': 0.01 * jax.random.normal(ks[0], (cin, cout), jnp.float32),
            'w1b': 0.01 * jax.random.normal(ks[1], (cin, cout), jnp.float32),
            'b1':  0.01 * jax.random.normal(ks[2], (1, cout), jnp.float32),
            'w2a': 0.01 * jax.random.normal(ks[3], (cout, cout), jnp.float32),
            'w2b': 0.01 * jax.random.normal(ks[4], (cout, cout), jnp.float32),
            'b2':  0.01 * jax.random.normal(ks[5], (1, cout), jnp.float32),
        }
        if cin != cout:
            p['wd'] = 0.01 * jax.random.normal(ks[6], (cin, cout), jnp.float32)
            p['bd'] = 0.01 * jax.random.normal(ks[7], (1, cout), jnp.float32)
        params.append(p)
    return params


# ------------------------------ pure-JAX reference ---------------------------
# Full-sequence reference (all timesteps), validating that the in-kernel
# last-timestep collapse is exactly equivalent to the module semantics.

def _ref_block(x, p):
    d = p['dilation']
    L = x.shape[1]

    def shift(h):
        return jnp.concatenate([h[:, d:, :], h[:, L - d:, :]], axis=1)

    def conv(h, wa, wb, b):
        return (jnp.einsum('btc,co->bto', shift(h), wa)
                + jnp.einsum('btc,co->bto', h, wb) + b[None])

    h1 = jnp.maximum(x, 0.0)
    y1 = conv(h1, p['w1a'], p['w1b'], p['b1'])
    h2 = jnp.maximum(y1, 0.0)
    y2 = conv(h2, p['w2a'], p['w2b'], p['b2'])
    res = (jnp.einsum('btc,co->bto', x, p['wd']) + p['bd'][None]) if 'wd' in p else x
    return jnp.maximum(y2 + res, 0.0)


def _ref_forward(x_ncl, params):
    x = jnp.transpose(x_ncl, (0, 2, 1)).astype(jnp.float32)
    for p in params:
        x = _ref_block(x, p)
    return x[:, -1:, :]


# ----------------------------------- main ------------------------------------

if __name__ == "__main__":
    key = jax.random.PRNGKey(0)
    B, L = 2, 8
    num_inputs = 4
    num_channels = [32, 16]

    kp, kx, kt = jax.random.split(key, 3)
    params = init_tcn_decoder_params(kp, num_inputs, num_channels, kernel_size=2)
    x = jax.random.normal(kx, (B, num_channels[0], L), jnp.float32)   # PyTorch NCL
    tgt = jax.random.normal(kt, (B, 1, num_inputs), jnp.float32)      # unused

    out = tcn_decoder_forward(x, tgt, params)
    out = jax.block_until_ready(out)
    assert out.shape == (B, 1, num_inputs), out.shape

    ref = _ref_forward(x, params)
    np.testing.assert_allclose(np.asarray(out), np.asarray(ref),
                               rtol=2e-2, atol=5e-4)

    print("KERNEL_OK")
</pallas_src>

<mosaic_0001>
module attributes {stable_mosaic.version = 11 : i64} {
  func.func @_tcn_decoder_kernel(%arg0: i32, %arg1: memref<8x32xf32, #tpu.memory_space<vmem>>, %arg2: memref<6x32x32xbf16, #tpu.memory_space<vmem>>, %arg3: memref<6x32xf32, #tpu.memory_space<vmem>>, %arg4: memref<8x4xf32, #tpu.memory_space<vmem>>) attributes {dimension_semantics = [#tpu.dimension_semantics<parallel>], iteration_bounds = array<i64: 1>, scalar_prefetch = 0 : i64, scratch_operands = 0 : i64, tpu.core_type = #tpu.core_type<tc>, window_params = [{transform_indices = @transform_0, window_bounds = array<i64: 8, 32>}, {pipeline_mode = #tpu.pipeline_mode<synchronous>, transform_indices = @transform_1, window_bounds = array<i64: 6, 32, 32>}, {pipeline_mode = #tpu.pipeline_mode<synchronous>, transform_indices = @transform_2, window_bounds = array<i64: 6, 32>}, {transform_indices = @transform_3, window_bounds = array<i64: 8, 4>}]} {
    %c0 = arith.constant 0 : index
    %c0_0 = arith.constant 0 : index
    %0 = vector.load %arg1[%c0, %c0_0] : memref<8x32xf32, #tpu.memory_space<vmem>>, vector<8x32xf32>
    %c0_1 = arith.constant 0 : index
    %c0_2 = arith.constant 0 : index
    %1 = vector.load %arg3[%c0_1, %c0_2] : memref<6x32xf32, #tpu.memory_space<vmem>>, vector<1x32xf32>
    %c1 = arith.constant 1 : index
    %c0_3 = arith.constant 0 : index
    %2 = vector.load %arg3[%c1, %c0_3] : memref<6x32xf32, #tpu.memory_space<vmem>>, vector<1x32xf32>
    %cst = arith.constant 0.000000e+00 : f32
    %3 = vector.broadcast %cst : f32 to vector<8x32xf32>
    %4 = arith.maximumf %0, %3 : vector<8x32xf32>
    %c0_4 = arith.constant 0 : index
    %c0_5 = arith.constant 0 : index
    %c0_6 = arith.constant 0 : index
    %5 = vector.load %arg2[%c0_4, %c0_5, %c0_6] : memref<6x32x32xbf16, #tpu.memory_space<vmem>>, vector<1x32x32xbf16>
    %6 = vector.shape_cast %5 : vector<1x32x32xbf16> to vector<32x32xbf16>
    %7 = arith.truncf %4 : vector<8x32xf32> to vector<8x32xbf16>
    %cst_7 = arith.constant dense<0.000000e+00> : vector<8x32xf32>
    %8 = tpu.matmul %7, %6, %cst_7 {dimension_numbers = #tpu.dot_dimension_numbers<[1], [0], [0], [1], [0, 0, 1, 1], [], []>} : vector<8x32xbf16>, vector<32x32xbf16>, vector<8x32xf32> -> vector<8x32xf32>
    %9 = vector.broadcast %1 : vector<1x32xf32> to vector<8x32xf32>
    %10 = arith.addf %8, %9 : vector<8x32xf32>
    %cst_8 = arith.constant 0.000000e+00 : f32
    %11 = vector.broadcast %cst_8 : f32 to vector<8x32xf32>
    %12 = arith.maximumf %10, %11 : vector<8x32xf32>
    %c1_9 = arith.constant 1 : index
    %c0_10 = arith.constant 0 : index
    %c0_11 = arith.constant 0 : index
    %13 = vector.load %arg2[%c1_9, %c0_10, %c0_11] : memref<6x32x32xbf16, #tpu.memory_space<vmem>>, vector<1x32x32xbf16>
    %14 = vector.shape_cast %13 : vector<1x32x32xbf16> to vector<32x32xbf16>
    %15 = arith.truncf %12 : vector<8x32xf32> to vector<8x32xbf16>
    %cst_12 = arith.constant dense<0.000000e+00> : vector<8x32xf32>
    %16 = tpu.matmul %15, %14, %cst_12 {dimension_numbers = #tpu.dot_dimension_numbers<[1], [0], [0], [1], [0, 0, 1, 1], [], []>} : vector<8x32xbf16>, vector<32x32xbf16>, vector<8x32xf32> -> vector<8x32xf32>
    %17 = vector.broadcast %2 : vector<1x32xf32> to vector<8x32xf32>
    %18 = arith.addf %16, %17 : vector<8x32xf32>
    %c2 = arith.constant 2 : index
    %c0_13 = arith.constant 0 : index
    %c0_14 = arith.constant 0 : index
    %19 = vector.load %arg2[%c2, %c0_13, %c0_14] : memref<6x32x32xbf16, #tpu.memory_space<vmem>>, vector<1x32x32xbf16>
    %20 = vector.shape_cast %19 : vector<1x32x32xbf16> to vector<32x32xbf16>
    %c2_15 = arith.constant 2 : index
    %c0_16 = arith.constant 0 : index
    %21 = vector.load %arg3[%c2_15, %c0_16] : memref<6x32xf32, #tpu.memory_space<vmem>>, vector<1x32xf32>
    %22 = arith.truncf %0 : vector<8x32xf32> to vector<8x32xbf16>
    %cst_17 = arith.constant dense<0.000000e+00> : vector<8x32xf32>
    %23 = tpu.matmul %22, %20, %cst_17 {dimension_numbers = #tpu.dot_dimension_numbers<[1], [0], [0], [1], [0, 0, 1, 1], [], []>} : vector<8x32xbf16>, vector<32x32xbf16>, vector<8x32xf32> -> vector<8x32xf32>
    %24 = vector.broadcast %21 : vector<1x32xf32> to vector<8x32xf32>
    %25 = arith.addf %23, %24 : vector<8x32xf32>
    %26 = arith.addf %18, %25 : vector<8x32xf32>
    %cst_18 = arith.constant 0.000000e+00 : f32
    %27 = vector.broadcast %cst_18 : f32 to vector<8x32xf32>
    %28 = arith.maximumf %26, %27 : vector<8x32xf32>
    %c3 = arith.constant 3 : index
    %c0_19 = arith.constant 0 : index
    %29 = vector.load %arg3[%c3, %c0_19] : memref<6x32xf32, #tpu.memory_space<vmem>>, vector<1x32xf32>
    %c4 = arith.constant 4 : index
    %c0_20 = arith.constant 0 : index
    %30 = vector.load %arg3[%c4, %c0_20] : memref<6x32xf32, #tpu.memory_space<vmem>>, vector<1x32xf32>
    %cst_21 = arith.constant 0.000000e+00 : f32
    %31 = vector.broadcast %cst_21 : f32 to vector<8x32xf32>
    %32 = arith.maximumf %28, %31 : vector<8x32xf32>
    %c3_22 = arith.constant 3 : index
    %c0_23 = arith.constant 0 : index
    %c0_24 = arith.constant 0 : index
    %33 = vector.load %arg2[%c3_22, %c0_23, %c0_24] : memref<6x32x32xbf16, #tpu.memory_space<vmem>>, vector<1x32x32xbf16>
    %34 = vector.shape_cast %33 : vector<1x32x32xbf16> to vector<32x32xbf16>
    %35 = arith.truncf %32 : vector<8x32xf32> to vector<8x32xbf16>
    %cst_25 = arith.constant dense<0.000000e+00> : vector<8x32xf32>
    %36 = tpu.matmul %35, %34, %cst_25 {dimension_numbers = #tpu.dot_dimension_numbers<[1], [0], [0], [1], [0, 0, 1, 1], [], []>} : vector<8x32xbf16>, vector<32x32xbf16>, vector<8x32xf32> -> vector<8x32xf32>
    %37 = vector.broadcast %29 : vector<1x32xf32> to vector<8x32xf32>
    %38 = arith.addf %36, %37 : vector<8x32xf32>
    %cst_26 = arith.constant 0.000000e+00 : f32
    %39 = vector.broadcast %cst_26 : f32 to vector<8x32xf32>
    %40 = arith.maximumf %38, %39 : vector<8x32xf32>
    %c4_27 = arith.constant 4 : index
    %c0_28 = arith.constant 0 : index
    %c0_29 = arith.constant 0 : index
    %41 = vector.load %arg2[%c4_27, %c0_28, %c0_29] : memref<6x32x32xbf16, #tpu.memory_space<vmem>>, vector<1x32x32xbf16>
    %42 = vector.shape_cast %41 : vector<1x32x32xbf16> to vector<32x32xbf16>
    %43 = arith.truncf %40 : vector<8x32xf32> to vector<8x32xbf16>
    %cst_30 = arith.constant dense<0.000000e+00> : vector<8x32xf32>
    %44 = tpu.matmul %43, %42, %cst_30 {dimension_numbers = #tpu.dot_dimension_numbers<[1], [0], [0], [1], [0, 0, 1, 1], [], []>} : vector<8x32xbf16>, vector<32x32xbf16>, vector<8x32xf32> -> vector<8x32xf32>
    %45 = vector.broadcast %30 : vector<1x32xf32> to vector<8x32xf32>
    %46 = arith.addf %44, %45 : vector<8x32xf32>
    %c5 = arith.constant 5 : index
    %c0_31 = arith.constant 0 : index
    %c0_32 = arith.constant 0 : index
    %47 = vector.load %arg2[%c5, %c0_31, %c0_32] : memref<6x32x32xbf16, #tpu.memory_space<vmem>>, vector<1x32x32xbf16>
    %48 = vector.shape_cast %47 : vector<1x32x32xbf16> to vector<32x32xbf16>
    %c5_33 = arith.constant 5 : index
    %c0_34 = arith.constant 0 : index
    %49 = vector.load %arg3[%c5_33, %c0_34] : memref<6x32xf32, #tpu.memory_space<vmem>>, vector<1x32xf32>
    %50 = arith.truncf %28 : vector<8x32xf32> to vector<8x32xbf16>
    %cst_35 = arith.constant dense<0.000000e+00> : vector<8x32xf32>
    %51 = tpu.matmul %50, %48, %cst_35 {dimension_numbers = #tpu.dot_dimension_numbers<[1], [0], [0], [1], [0, 0, 1, 1], [], []>} : vector<8x32xbf16>, vector<32x32xbf16>, vector<8x32xf32> -> vector<8x32xf32>
    %52 = vector.broadcast %49 : vector<1x32xf32> to vector<8x32xf32>
    %53 = arith.addf %51, %52 : vector<8x32xf32>
    %54 = arith.addf %46, %53 : vector<8x32xf32>
    %cst_36 = arith.constant 0.000000e+00 : f32
    %55 = vector.broadcast %cst_36 : f32 to vector<8x32xf32>
    %56 = arith.maximumf %54, %55 : vector<8x32xf32>
    %57 = vector.extract_strided_slice %56 {offsets = [0, 0], sizes = [8, 4], strides = [1, 1]} : vector<8x32xf32> to vector<8x4xf32>
    %c0_37 = arith.constant 0 : index
    %c0_38 = arith.constant 0 : index
    %58 = vector.load %arg4[%c0_37, %c0_38] : memref<8x4xf32, #tpu.memory_space<vmem>>, vector<8x4xf32>
    tpu.vector_store %arg4[%c0_37, %c0_38], %57 {strides = array<i32>} : memref<8x4xf32, #tpu.memory_space<vmem>>, vector<8x4xf32>,
    return
  }
  func.func @transform_0(%arg0: i32) -> (i32, i32) {
    %c0_i32 = arith.constant 0 : i32
    %c0_i32_0 = arith.constant 0 : i32
    return %arg0, %c0_i32 : i32, i32
  }
  func.func @transform_1(%arg0: i32) -> (i32, i32, i32) {
    %c0_i32 = arith.constant 0 : i32
    %c0_i32_0 = arith.constant 0 : i32
    %c0_i32_1 = arith.constant 0 : i32
    %c0_i32_2 = arith.constant 0 : i32
    return %c0_i32, %c0_i32_0, %c0_i32_1 : i32, i32, i32
  }
  func.func @transform_2(%arg0: i32) -> (i32, i32) {
    %c0_i32 = arith.constant 0 : i32
    %c0_i32_0 = arith.constant 0 : i32
    %c0_i32_1 = arith.constant 0 : i32
    return %c0_i32, %c0_i32_0 : i32, i32
  }
  func.func @transform_3(%arg0: i32) -> (i32, i32) {
    %c0_i32 = arith.constant 0 : i32
    %c0_i32_0 = arith.constant 0 : i32
    return %arg0, %c0_i32 : i32, i32
  }
}

</mosaic_0001>

<bundles_post_ra>
// kernel: tpu_custom_call.1
= control target key start
LH: loop header
LB: loop body
LE: loop exit
PB: predicated region body
PF: predicated region fallthrough
CT: control target
= control target key end

     0   :  { %8 = vsyncpa [#allocation3], 0  ;;  %s752_s0 = inlined_call_operand.hbm [shape: f32[8,32], index: 0, kind: input, shape index: {}]   ;;  %s753_s1 = inlined_call_operand.hbm [shape: bf16[6,32,32], index: 1, kind: input, shape index: {}]   ;;  %s754_s2 = inlined_call_operand.hbm [shape: f32[6,32], index: 2, kind: input, shape index: {}]   ;;  %s755_s3 = inlined_call_operand.vmem [shape: f32[8,4], index: 3, kind: output, shape index: {}]  }
   0x1   :  { %9 = vsyncpa [#allocation5], 0  ;;  %s656_s12 = smov [#allocation4]   ;;  %s586_s16 = scalar_lea.hbm %s753_s1, 1536 }
   0x2   :  { %s25_s13 = sshll.u32 %s656_s12, 4  ;;  %p587_p0 = scmp.ne.s32.totalorder %s753_s1, %s586_s16  ;;  %s26_s13 = int_to_ptr.vmem [resolvable:$true] %s25_s13 }
   0x3   :  { %p590_p1 = scmp.lt.u32.totalorder %s586_s16, %s753_s1 }
   0x5   :  { %p592_p2 = pnand %p590_p1, %p587_p0 }
   0x7   :  { %595 = shalt.err (!%p592_p2)
}
   0x8   :  { %s596_s21 = scalar_lea.vmem %s26_s13, 1536  ;;  %p601_p4 = scmp.lt.s32.totalorder %s26_s13, %s26_s13 }
   0x9   :  { %p597_p3 = scmp.ne.s32.totalorder %s26_s13, %s596_s21  ;;  %p602_p5 = scmp.lt.s32.totalorder %s596_s21, %s596_s21 }
   0xb   :  { %p603_p6 = por %p602_p5, %p601_p4 }
   0xd   :  { %p604_p7 = pnand %p603_p6, %p597_p3 }
   0xf   :  { %607 = shalt.err (!%p604_p7)
}
  0x10   :  { %s657_s22 = smov 64   ;;  %s658_s23 = smov 4  }
  0x11   :  { %31 = dma.hbm_to_vmem [thread:$0]  %s753_s1, 1536, %s26_s13, [#allocation5], %s657_s22, %s657_s22, %s658_s23  }
  0x12   :  { %s659_s26 = smov [#allocation2]   ;;  %s660_s28 = smov [#allocation6]  }
  0x13   :  { %s16_s27 = sshll.u32 %s659_s26, 4  ;;  %s38_s29 = sshll.u32 %s660_s28, 4  ;;  %s17_s27 = int_to_ptr.vmem [resolvable:$true] %s16_s27  ;;  %s39_s29 = int_to_ptr.vmem [resolvable:$true] %s38_s29 }
  0x14   :  { %s608_s5 = scalar_lea.hbm %s752_s0, 128 }
  0x15   :  { %p609_p8 = scmp.ne.s32.totalorder %s752_s0, %s608_s5  ;;  %p612_p9 = scmp.lt.u32.totalorder %s608_s5, %s752_s0 }
  0x17   :  { %p614_p10 = pnand %p612_p9, %p609_p8 }
  0x19   :  { %617 = shalt.err (!%p614_p10)
}
  0x1a   :  { %s618_s1 = scalar_lea.vmem %s17_s27, 128  ;;  %p623_p12 = scmp.lt.s32.totalorder %s17_s27, %s17_s27 }
  0x1b   :  { %p619_p11 = scmp.ne.s32.totalorder %s17_s27, %s618_s1  ;;  %p624_p13 = scmp.lt.s32.totalorder %s618_s1, %s618_s1 }
  0x1d   :  { %p625_p0 = por %p624_p13, %p623_p12 }
  0x1f   :  { %p626_p1 = pnand %p625_p0, %p619_p11 }
  0x21   :  { %629 = shalt.err (!%p626_p1)
}
  0x22   :  { %19 = dma.hbm_to_vmem [thread:$0]  %s752_s0, 128, %s17_s27, [#allocation3]  }
  0x23   :  { %s630_s14 = scalar_lea.hbm %s754_s2, 128 }
  0x24   :  { %p631_p2 = scmp.ne.s32.totalorder %s754_s2, %s630_s14  ;;  %p634_p3 = scmp.lt.u32.totalorder %s630_s14, %s754_s2 }
  0x26   :  { %p636_p4 = pnand %p634_p3, %p631_p2 }
  0x28   :  { %639 = shalt.err (!%p636_p4)
}
  0x29   :  { %s640_s19 = scalar_lea.vmem %s39_s29, 128  ;;  %p645_p6 = scmp.lt.s32.totalorder %s39_s29, %s39_s29 }
  0x2a   :  { %p641_p5 = scmp.ne.s32.totalorder %s39_s29, %s640_s19  ;;  %p646_p7 = scmp.lt.s32.totalorder %s640_s19, %s640_s19 }
  0x2c   :  { %p647_p8 = por %p646_p7, %p645_p6 }
  0x2e   :  { %p648_p9 = pnand %p647_p8, %p641_p5 }
  0x30   :  { %651 = shalt.err (!%p648_p9)
}
  0x31   :  { %41 = dma.hbm_to_vmem [thread:$0]  %s754_s2, 128, %s39_s29, [#allocation5]  }
  0x32   :  { %652 = dma.done.wait [#allocation3], 128  }
  0x33   :  { %653 = vsyncadd [#allocation3], 4294967168 }
  0x34   :  { %654 = dma.done.wait [#allocation5], 1664  }
  0x35   :  { %655 = vsyncadd [#allocation5], 4294965632  ;;  %v661_v0 = vmov 0.0   ;;  %vm662_vm0 = vmmov 0   ;;  %v574_v1 = vld [vmem:[#allocation4] sm:$0xff]   ;;  %v575_v2 = vld [vmem:[#allocation4 + $0x8] sm:$0xff]  }
  0x36   :  { %507 = vmatprep.subr.bf16.mxu1 %v661_v0  ;;  %511 = vmatprep.mubr.msk.bf16.mxu1 %vm662_vm0, %v661_v0  ;;  %v52_v3 = vld [vmem:[#allocation2] sm:$0xff]  ;;  %vm77_vm1 = vcmask 261120   ;;  %v576_v5 = vld [vmem:[#allocation4 + $0x10] sm:$0xff]   ;;  %v465_v8 = vld [vmem:[#allocation6] ss:$0 sm:$0xff]  ;;  %vm457_vm2 = vcmask 31744  }
  0x37   :  { %531 = vmatprep.subr.bf16.mxu0 %v661_v0  ;;  %535 = vmatprep.mubr.msk.bf16.mxu0 %vm662_vm0, %v661_v0  ;;  %v55_v4 = vmax.f32 %v52_v3, 0.0  ;;  %v577_v7 = vld [vmem:[#allocation4 + $0x18] sm:$0xff]   ;;  %v578_v15 = vld [vmem:[#allocation4 + $0x20] sm:$0xff]   ;;  %v579_v17 = vld [vmem:[#allocation4 + $0x28] sm:$0xff]   ;;  %v193_v18 = vpack.c.bf16 %v52_v3, %v52_v3 }
  0x38   :  { %508 = vmatpush3.bf16.msra.mxu1 %v574_v1  ;;  %v580_v19 = vld [vmem:[#allocation4 + $0x30] sm:$0xff]   ;;  %v581_v20 = vld [vmem:[#allocation4 + $0x38] sm:$0xff]   ;;  %v469_v21 = vld [vmem:[#allocation6 + $0x1] ss:$0 sm:$0xff] }
  0x39   :  { %509 = vmatprep.subr.bf16.mxu1 %v661_v0  ;;  %v60_v6 = vpack.c.bf16 %v55_v4, %v55_v4  ;;  %532 = vmatpush3.bf16.msra.mxu0 %v580_v19  ;;  %v473_v22 = vld [vmem:[#allocation6 + $0x2] ss:$0 sm:$0xff]  ;;  %v583_v33 = vld [vmem:[#allocation4 + $0x48] sm:$0xff]   ;;  %v477_v34 = vld [vmem:[#allocation6 + $0x3] ss:$0 sm:$0xff] }
  0x3a   :  { %533 = vmatprep.subr.bf16.mxu0 %v661_v0  ;;  %v555_v23 = vadd.f32 %v473_v22, %v469_v21  ;;  %v582_v31 = vld [vmem:[#allocation4 + $0x40] sm:$0xff]   ;;  %v584_v41 = vld [vmem:[#allocation4 + $0x50] sm:$0xff]   ;;  %v585_v43 = vld [vmem:[#allocation4 + $0x58] sm:$0xff]  }
  0x3b   :  { %v481_v45 = vld [vmem:[#allocation6 + $0x4] ss:$0 sm:$0xff]  ;;  %v485_v46 = vld [vmem:[#allocation6 + $0x5] ss:$0 sm:$0xff] }
  0x3c   :  { %510 = vmatpush3.bf16.msra.mxu1 %v575_v2  ;;  %v557_v47 = vadd.f32 %v485_v46, %v481_v45 }
  0x3d   :  { %515 = vmatprep.subr.bf16.mxu1 %v661_v0  ;;  %534 = vmatpush3.bf16.msra.mxu0 %v581_v20 }
  0x3e   :  { %539 = vmatprep.subr.bf16.mxu0 %v661_v0 }
  0x3f   :  { %512 = vmatmul.mubr.msk.bf16.vlgmr.msra.gmra.mrb[0].mxu1 %vm77_vm1, %v60_v6 }
  0x40   :  { %516 = vmatpush3.bf16.msra.mxu1 %v576_v5  ;;  %519 = vmatprep.mubr.msk.bf16.mxu1 %vm662_vm0, %v661_v0 }
  0x41   :  { %517 = vmatprep.subr.bf16.mxu1 %v661_v0 }
  0x44   :  { %518 = vmatpush3.bf16.msra.mxu1 %v577_v7 }
  0x45   :  { %523 = vmatprep.subr.bf16.mxu1 %v661_v0 }
 0x112   :  { %v115_v9 = vpop.f32.mrb[0].mxu1 }
 0x113   :  { %v116_v10 = vadd.f32 %v465_v8, %v115_v9  ;;  %v513_v11 = vpop.f32.mrb[1].mxu1 }
 0x114   :  { %v118_v12 = vpop.f32.mrb[2].mxu1 }
 0x115   :  { %v121_v13 = vmax.f32 %v116_v10, 0.0  ;;  %v514_v14 = vpop.f32.mrb[3].mxu1 }
 0x117   :  { %v127_v16 = vpack.c.bf16 %v121_v13, %v121_v13 }
 0x119   :  { %520 = vmatmul.mubr.msk.bf16.vlgmr.msra.gmra.mrb[4].mxu1 %vm77_vm1, %v127_v16 }
 0x11a   :  { %524 = vmatpush3.bf16.msra.mxu1 %v578_v15  ;;  %527 = vmatprep.mubr.msk.bf16.mxu1 %vm662_vm0, %v661_v0 }
 0x11b   :  { %525 = vmatprep.subr.bf16.mxu1 %v661_v0 }
 0x11e   :  { %526 = vmatpush3.bf16.msra.mxu1 %v579_v17 }
 0x125   :  { %528 = vmatmul.mubr.msk.bf16.vlgmr.msra.gmra.mrb[4].mxu1 %vm77_vm1, %v193_v18 }
 0x1f8   :  { %v247_v24 = vpop.f32.mrb[4].mxu1 }
 0x1f9   :  { %v556_v25 = vadd.f32 %v555_v23, %v247_v24  ;;  %v529_v26 = vpop.f32.mrb[5].mxu1 }
 0x1fa   :  { %v250_v27 = vpop.f32.mrb[6].mxu1 }
 0x1fb   :  { %v254_v28 = vmax.f32 %v556_v25, 0.0  ;;  %v530_v29 = vpop.f32.mrb[7].mxu1 }
 0x1fd   :  { %v257_v30 = vmax.f32 %v254_v28, 0.0  ;;  %v395_v44 = vpack.c.bf16 %v254_v28, %v254_v28 }
 0x1ff   :  { %v263_v32 = vpack.c.bf16 %v257_v30, %v257_v30 }
 0x201   :  { %536 = vmatmul.mubr.msk.bf16.vlgmr.msra.gmra.mrb[0].mxu0 %vm77_vm1, %v263_v32 }
 0x202   :  { %540 = vmatpush3.bf16.msra.mxu0 %v582_v31  ;;  %543 = vmatprep.mubr.msk.bf16.mxu0 %vm662_vm0, %v661_v0 }
 0x203   :  { %541 = vmatprep.subr.bf16.mxu0 %v661_v0 }
 0x206   :  { %542 = vmatpush3.bf16.msra.mxu0 %v583_v33 }
 0x207   :  { %547 = vmatprep.subr.bf16.mxu0 %v661_v0 }
 0x2d4   :  { %v317_v35 = vpop.f32.mrb[0].mxu0 }
 0x2d5   :  { %v318_v36 = vadd.f32 %v477_v34, %v317_v35  ;;  %v537_v37 = vpop.f32.mrb[1].mxu0 }
 0x2d6   :  { %v320_v38 = vpop.f32.mrb[2].mxu0 }
 0x2d7   :  { %v323_v39 = vmax.f32 %v318_v36, 0.0  ;;  %v538_v40 = vpop.f32.mrb[3].mxu0 }
 0x2d9   :  { %v329_v42 = vpack.c.bf16 %v323_v39, %v323_v39 }
 0x2db   :  { %544 = vmatmul.mubr.msk.bf16.vlgmr.msra.gmra.mrb[4].mxu0 %vm77_vm1, %v329_v42 }
 0x2dc   :  { %548 = vmatpush3.bf16.msra.mxu0 %v584_v41  ;;  %551 = vmatprep.mubr.msk.bf16.mxu0 %vm662_vm0, %v661_v0 }
 0x2dd   :  { %549 = vmatprep.subr.bf16.mxu0 %v661_v0 }
 0x2e0   :  { %550 = vmatpush3.bf16.msra.mxu0 %v585_v43 }
 0x2e7   :  { %552 = vmatmul.mubr.msk.bf16.vlgmr.msra.gmra.mrb[4].mxu0 %vm77_vm1, %v395_v44 }
 0x3ba   :  { %v449_v48 = vpop.f32.mrb[4].mxu0 }
 0x3bb   :  { %v558_v49 = vadd.f32 %v557_v47, %v449_v48  ;;  %v553_v50 = vpop.f32.mrb[5].mxu0 }
 0x3bc   :  { %v452_v51 = vpop.f32.mrb[6].mxu0 }
 0x3bd   :  { %v456_v52 = vmax.f32 %v558_v49, 0.0  ;;  %v554_v53 = vpop.f32.mrb[7].mxu0 }
 0x3bf   :  { %458 = vst.msk [vmem:[%s755_s3] sm:$0xff] %vm457_vm2, %v456_v52 }
 0x3c0   :  { %463 = vsyncpa [#allocation3], 1 }
 0x3c1   :  { %464 = vsyncpa [#allocation5], 1 }

</bundles_post_ra>
